<compile_context>
chip_gen: v6e
topology: v6e:2x2x1
jax: 0.10.0
libtpu: 0.0.40
codegen_flags: <defaults>
</compile_context>

<pallas_src>
import jax
import jax.numpy as jnp
from jax import lax
from jax.experimental import pallas as pl
from jax.experimental.pallas import tpu as pltpu

_LANE = 128


# ------------------------------ tiling helpers ------------------------------

def _round_up(n, m):
    return ((n + m - 1) // m) * m


def _sublane(dtype):
    # Native packed sublane tile height: f32 -> 8, bf16 -> 16, int8/fp8 -> 32.
    return max(8, 32 // jnp.dtype(dtype).itemsize)


def _divisor_tile(n, unit, target):
    """Largest multiple of `unit` dividing `n` that is <= max(target, unit)."""
    m = n // unit
    cap = max(1, target // unit)
    best = 1
    for d in range(1, m + 1):
        if m % d == 0 and d <= cap:
            best = d
    return best * unit


def _choose_tiles(T, bp, dp, itemsize, sublane,
                  f32_tile_bytes=2 << 20, vmem_budget=24 << 20,
                  min_parallel=2, max_tt=8):
    """Pick (tb, td, tt, vmem_bytes): batch/feature/time-block tile sizes."""
    # Feature tile: full lane-dense width unless the batch axis cannot supply
    # >=2 parallel tiles (v7x has 2 TensorCores) and D can be split.
    td = dp
    tb = _divisor_tile(bp, sublane, max(sublane, f32_tile_bytes // (td * 4)))
    if bp // tb < min_parallel and dp // _LANE >= min_parallel:
        td = _divisor_tile(dp, _LANE, dp // min_parallel)
        tb = _divisor_tile(bp, sublane, max(sublane, f32_tile_bytes // (td * 4)))
    # Time block: amortize ~0.35us/grid-step overhead.  Largest divisor of T
    # that keeps double-buffered x/out + h0 + f32 carry under budget and keeps
    # the unrolled inner loop short.
    per_t = 4 * tb * td * itemsize            # 2x dbl-buffered x + 2x out
    fixed = tb * td * (2 * itemsize + 4)      # h0 dbl-buffer + f32 carry
    tt_cap = min(max_tt, max(1, (vmem_budget - fixed) // max(per_t, 1)))
    tt = 1
    for d in range(1, T + 1):
        if T % d == 0 and d <= tt_cap:
            tt = d
    vmem_bytes = tt * per_t + fixed + 8 * td * 4 + (1 << 20)
    return tb, td, tt, int(vmem_bytes)


def _vmem_limit(vmem_bytes):
    # Explicit scoped-VMEM budget (v5e default is only 16 MiB; v7x physical
    # VMEM is 64 MiB, so cap well below it).
    return int(min(max(2 * vmem_bytes, 16 << 20), 48 << 20))


# --------------------------- single-step cell ---------------------------

def _indrnn_cell_kernel(x_ref, h_ref, w_ref, u_ref, b_ref, o_ref):
    # All arithmetic + tanh in f32 (v5e has no bf16 VPU/EUP).  Params are
    # (1, td) and broadcast over the batch sublanes inside the VPU ops.
    x = x_ref[...].astype(jnp.float32)
    h = h_ref[...].astype(jnp.float32)
    w = w_ref[...].astype(jnp.float32)
    u = u_ref[...].astype(jnp.float32)
    b = b_ref[...].astype(jnp.float32)
    o_ref[...] = jnp.tanh(x * w + u * h + b).astype(o_ref.dtype)


def indrnn_cell(x, h, w, u, b):
    """Single IndRNN step: tanh(x*w + u*h + b).  x, h: (B, D); w, u, b: (D,)."""
    B, D = x.shape
    sub = _sublane(x.dtype)
    itemsize = jnp.dtype(x.dtype).itemsize
    bp, dp = _round_up(B, sub), _round_up(D, _LANE)
    tb, td, _, _ = _choose_tiles(1, bp, dp, itemsize, sub)

    # Pad only when actually needed (aligned shapes go straight through).
    padded = (bp, dp) != (B, D)
    if padded:
        x = jnp.pad(x, ((0, bp - B), (0, dp - D)))
        h = jnp.pad(h, ((0, bp - B), (0, dp - D)))

    def as_row(v):
        v = v.reshape(1, D)
        return jnp.pad(v, ((0, 0), (0, dp - D))) if dp != D else v

    wr, ur, br = as_row(w), as_row(u), as_row(b)

    act_spec = pl.BlockSpec((tb, td), lambda i, j: (i, j))
    par_spec = pl.BlockSpec((1, td), lambda i, j: (0, j))
    vmem_bytes = 6 * tb * td * itemsize + 8 * td * 4 + (1 << 20)

    out = pl.pallas_call(
        _indrnn_cell_kernel,
        out_shape=jax.ShapeDtypeStruct((bp, dp), x.dtype),
        grid_spec=pltpu.PrefetchScalarGridSpec(
            num_scalar_prefetch=0,
            grid=(bp // tb, dp // td),
            in_specs=[act_spec, act_spec, par_spec, par_spec, par_spec],
            out_specs=act_spec,
        ),
        compiler_params=pltpu.CompilerParams(
            dimension_semantics=("parallel", "parallel"),
            vmem_limit_bytes=_vmem_limit(vmem_bytes)),
    )(x, h, wr, ur, br)
    return out[:B, :D] if padded else out


# --------------------------- fused T-step sequence ---------------------------

def _indrnn_seq_kernel(x_ref, h0_ref, w_ref, u_ref, b_ref, o_ref, h_acc):
    # Recurrent carry lives in an f32 VMEM scratch; re-initialize it whenever
    # a new (batch-tile, feature-tile) starts (time blocks are innermost).
    @pl.when(pl.program_id(2) == 0)
    def _():
        h_acc[...] = h0_ref[...].astype(jnp.float32)

    # Hoist parameter loads/upcasts out of the time loop.  They stay (1, td):
    # the elementwise ops sublane-broadcast them cheaply instead of paying
    # three extra full-tile VMEM loads per timestep.
    w = w_ref[...].astype(jnp.float32)
    u = u_ref[...].astype(jnp.float32)
    b = b_ref[...].astype(jnp.float32)

    def step(t, _):
        x = x_ref[t].astype(jnp.float32)                 # (tb, td)
        h_new = jnp.tanh(x * w + u * h_acc[...] + b)
        h_acc[...] = h_new                               # carry stays f32
        o_ref[t] = h_new.astype(o_ref.dtype)
        return _

    lax.fori_loop(0, x_ref.shape[0], step, None, unroll=True)


def indrnn_sequence(xs, h0, w, u, b):
    """Run T IndRNN steps in one fused kernel.

    xs: (T, B, D), h0: (B, D), w/u/b: (D,).  Returns hs: (T, B, D).
    """
    T, B, D = xs.shape
    sub = _sublane(xs.dtype)
    itemsize = jnp.dtype(xs.dtype).itemsize
    bp, dp = _round_up(B, sub), _round_up(D, _LANE)
    tb, td, tt, vmem_bytes = _choose_tiles(T, bp, dp, itemsize, sub)

    padded = (bp, dp) != (B, D)
    if padded:                        # pad only the axes that need it
        xs = jnp.pad(xs, ((0, 0), (0, bp - B), (0, dp - D)))
        h0 = jnp.pad(h0, ((0, bp - B), (0, dp - D)))

    def as_row(v):
        v = v.reshape(1, D)
        return jnp.pad(v, ((0, 0), (0, dp - D))) if dp != D else v

    wr, ur, br = as_row(w), as_row(u), as_row(b)

    x_spec = pl.BlockSpec((tt, tb, td), lambda i, j, k: (k, i, j))
    h0_spec = pl.BlockSpec((tb, td), lambda i, j, k: (i, j))
    par_spec = pl.BlockSpec((1, td), lambda i, j, k: (0, j))
    out_spec = pl.BlockSpec((tt, tb, td), lambda i, j, k: (k, i, j))

    out = pl.pallas_call(
        _indrnn_seq_kernel,
        out_shape=jax.ShapeDtypeStruct((T, bp, dp), xs.dtype),
        grid_spec=pltpu.PrefetchScalarGridSpec(
            num_scalar_prefetch=0,
            # time innermost ("arbitrary"): the hidden state carries over it.
            grid=(bp // tb, dp // td, T // tt),
            in_specs=[x_spec, h0_spec, par_spec, par_spec, par_spec],
            out_specs=out_spec,
            scratch_shapes=[pltpu.VMEM((tb, td), jnp.float32)],
        ),
        compiler_params=pltpu.CompilerParams(
            dimension_semantics=("parallel", "parallel", "arbitrary"),
            vmem_limit_bytes=_vmem_limit(vmem_bytes)),
    )(xs, h0, wr, ur, br)
    return out[:, :B, :D] if padded else out


# --------------------------- params / reference ---------------------------

def init_indrnn_params(key, input_dim):
    """Matches IndRNNCell.reset_parameters(): w<-1, u~N(0,0.01), b<-0."""
    w = jnp.ones((input_dim,), dtype=jnp.float32)
    u = 0.01 * jax.random.normal(key, (input_dim,), dtype=jnp.float32)
    b = jnp.zeros((input_dim,), dtype=jnp.float32)
    return w, u, b


def indrnn_sequence_ref(xs, h0, w, u, b):
    hs = []
    h = h0.astype(jnp.float32)
    for t in range(xs.shape[0]):
        h = jnp.tanh(xs[t].astype(jnp.float32) * w + u * h + b)
        hs.append(h)
    return jnp.stack(hs)


if __name__ == "__main__":
    key = jax.random.PRNGKey(0)
    k_x, k_h, k_u, k_seq = jax.random.split(key, 4)

    # ---- single-step cell (matches Module.forward), small unaligned shape ----
    batch, input_dim = 2, 32
    x = jax.random.normal(k_x, (batch, input_dim), dtype=jnp.float32)
    h = jax.random.normal(k_h, (batch, input_dim), dtype=jnp.float32)
    w, u, b = init_indrnn_params(k_u, input_dim)

    out = jax.block_until_ready(indrnn_cell(x, h, w, u, b))
    ref = jnp.tanh(x * w + u * h + b)
    assert out.shape == (batch, input_dim)
    assert jnp.allclose(out, ref, atol=1e-6, rtol=1e-6), "cell mismatch"

    # ---- fused sequence, lane-dense shape (T, B, D) = (8, 8, 128) ----
    T, B2, D2 = 8, 8, 128
    ks = jax.random.split(k_seq, 3)
    xs = jax.random.normal(ks[0], (T, B2, D2), dtype=jnp.float32)
    h0 = jax.random.normal(ks[1], (B2, D2), dtype=jnp.float32)
    w2, u2, b2 = init_indrnn_params(ks[2], D2)

    hs = jax.block_until_ready(indrnn_sequence(xs, h0, w2, u2, b2))
    hs_ref = indrnn_sequence_ref(xs, h0, w2, u2, b2)
    assert hs.shape == (T, B2, D2)
    assert jnp.allclose(hs, hs_ref, atol=1e-5, rtol=1e-5), "sequence mismatch"

    # ---- bf16 storage / f32 compute + f32 recurrent carry ----
    xs_bf = xs.astype(jnp.bfloat16)
    h0_bf = h0.astype(jnp.bfloat16)
    hs_bf = jax.block_until_ready(indrnn_sequence(xs_bf, h0_bf, w2, u2, b2))
    hs_bf_ref = indrnn_sequence_ref(xs_bf, h0_bf, w2, u2, b2)
    assert hs_bf.dtype == jnp.bfloat16
    assert jnp.allclose(hs_bf.astype(jnp.float32), hs_bf_ref, atol=2e-2), \
        "bf16 sequence mismatch"

    print("KERNEL_OK")
</pallas_src>

<mosaic_0001>
module attributes {stable_mosaic.version = 11 : i64} {
  func.func @_indrnn_cell_kernel(%arg0: i32, %arg1: i32, %arg2: memref<8x128xf32, #tpu.memory_space<vmem>>, %arg3: memref<8x128xf32, #tpu.memory_space<vmem>>, %arg4: memref<1x128xf32, #tpu.memory_space<vmem>>, %arg5: memref<1x128xf32, #tpu.memory_space<vmem>>, %arg6: memref<1x128xf32, #tpu.memory_space<vmem>>, %arg7: memref<8x128xf32, #tpu.memory_space<vmem>>) attributes {dimension_semantics = [#tpu.dimension_semantics<parallel>, #tpu.dimension_semantics<parallel>], iteration_bounds = array<i64: 1, 1>, scalar_prefetch = 0 : i64, scratch_operands = 0 : i64, tpu.core_type = #tpu.core_type<tc>, window_params = [{transform_indices = @transform_0, window_bounds = array<i64: 8, 128>}, {transform_indices = @transform_1, window_bounds = array<i64: 8, 128>}, {transform_indices = @transform_2, window_bounds = array<i64: 1, 128>}, {transform_indices = @transform_3, window_bounds = array<i64: 1, 128>}, {transform_indices = @transform_4, window_bounds = array<i64: 1, 128>}, {transform_indices = @transform_5, window_bounds = array<i64: 8, 128>}]} {
    %c0 = arith.constant 0 : index
    %c0_0 = arith.constant 0 : index
    %0 = vector.load %arg2[%c0, %c0_0] : memref<8x128xf32, #tpu.memory_space<vmem>>, vector<8x128xf32>
    %c0_1 = arith.constant 0 : index
    %c0_2 = arith.constant 0 : index
    %1 = vector.load %arg3[%c0_1, %c0_2] : memref<8x128xf32, #tpu.memory_space<vmem>>, vector<8x128xf32>
    %c0_3 = arith.constant 0 : index
    %c0_4 = arith.constant 0 : index
    %2 = vector.load %arg4[%c0_3, %c0_4] : memref<1x128xf32, #tpu.memory_space<vmem>>, vector<1x128xf32>
    %c0_5 = arith.constant 0 : index
    %c0_6 = arith.constant 0 : index
    %3 = vector.load %arg5[%c0_5, %c0_6] : memref<1x128xf32, #tpu.memory_space<vmem>>, vector<1x128xf32>
    %c0_7 = arith.constant 0 : index
    %c0_8 = arith.constant 0 : index
    %4 = vector.load %arg6[%c0_7, %c0_8] : memref<1x128xf32, #tpu.memory_space<vmem>>, vector<1x128xf32>
    %5 = vector.broadcast %2 : vector<1x128xf32> to vector<8x128xf32>
    %6 = arith.mulf %0, %5 : vector<8x128xf32>
    %7 = vector.broadcast %3 : vector<1x128xf32> to vector<8x128xf32>
    %8 = arith.mulf %7, %1 : vector<8x128xf32>
    %9 = arith.addf %6, %8 : vector<8x128xf32>
    %10 = vector.broadcast %4 : vector<1x128xf32> to vector<8x128xf32>
    %11 = arith.addf %9, %10 : vector<8x128xf32>
    %12 = math.tanh %11 : vector<8x128xf32>
    %c0_9 = arith.constant 0 : index
    %c0_10 = arith.constant 0 : index
    %13 = vector.load %arg7[%c0_9, %c0_10] : memref<8x128xf32, #tpu.memory_space<vmem>>, vector<8x128xf32>
    tpu.vector_store %arg7[%c0_9, %c0_10], %12 {strides = array<i32>} : memref<8x128xf32, #tpu.memory_space<vmem>>, vector<8x128xf32>,
    return
  }
  func.func @transform_0(%arg0: i32, %arg1: i32) -> (i32, i32) {
    %c0_i32 = arith.constant 0 : i32
    return %arg0, %arg1 : i32, i32
  }
  func.func @transform_1(%arg0: i32, %arg1: i32) -> (i32, i32) {
    %c0_i32 = arith.constant 0 : i32
    return %arg0, %arg1 : i32, i32
  }
  func.func @transform_2(%arg0: i32, %arg1: i32) -> (i32, i32) {
    %c0_i32 = arith.constant 0 : i32
    %c0_i32_0 = arith.constant 0 : i32
    return %c0_i32, %arg1 : i32, i32
  }
  func.func @transform_3(%arg0: i32, %arg1: i32) -> (i32, i32) {
    %c0_i32 = arith.constant 0 : i32
    %c0_i32_0 = arith.constant 0 : i32
    return %c0_i32, %arg1 : i32, i32
  }
  func.func @transform_4(%arg0: i32, %arg1: i32) -> (i32, i32) {
    %c0_i32 = arith.constant 0 : i32
    %c0_i32_0 = arith.constant 0 : i32
    return %c0_i32, %arg1 : i32, i32
  }
  func.func @transform_5(%arg0: i32, %arg1: i32) -> (i32, i32) {
    %c0_i32 = arith.constant 0 : i32
    return %arg0, %arg1 : i32, i32
  }
}

</mosaic_0001>

<bundles_post_ra>
// kernel: tpu_custom_call.1
= control target key start
LH: loop header
LB: loop body
LE: loop exit
PB: predicated region body
PF: predicated region fallthrough
CT: control target
= control target key end

     0   :  { %10 = vsyncpa [#allocation3], 0  ;;  %s215_s0 = inlined_call_operand.hbm [shape: f32[8,128], index: 0, kind: input, shape index: {}]   ;;  %s216_s1 = inlined_call_operand.hbm [shape: f32[8,128], index: 1, kind: input, shape index: {}]   ;;  %s217_s2 = inlined_call_operand.vmem [shape: f32[1,128], index: 2, kind: input, shape index: {}]   ;;  %s218_s3 = inlined_call_operand.vmem [shape: f32[1,128], index: 3, kind: input, shape index: {}]   ;;  %s219_s4 = inlined_call_operand.vmem [shape: f32[1,128], index: 4, kind: input, shape index: {}]   ;;  %s220_s5 = inlined_call_operand.hbm [shape: f32[8,128], index: 5, kind: output, shape index: {}]  }
   0x1   :  { %11 = vsyncpa [#allocation6], 0 }
   0x2   :  { %12 = vsyncpa [#allocation4], 0  ;;  %s164_s18 = smov [#allocation2]   ;;  %s165_s20 = smov [#allocation5]  }
   0x3   :  { %s19_s19 = sshll.u32 %s164_s18, 4  ;;  %s29_s21 = sshll.u32 %s165_s20, 4  ;;  %s20_s19 = int_to_ptr.vmem [resolvable:$true] %s19_s19  ;;  %s30_s21 = int_to_ptr.vmem [resolvable:$true] %s29_s21 }
   0x4   :  { %s106_s22 = scalar_lea.vmem %s20_s19, 128  ;;  %p111_p1 = scmp.lt.s32.totalorder %s20_s19, %s20_s19 }
   0x5   :  { %p107_p0 = scmp.ne.s32.totalorder %s20_s19, %s106_s22  ;;  %p112_p2 = scmp.lt.s32.totalorder %s106_s22, %s106_s22 }
   0x7   :  { %p113_p3 = por %p112_p2, %p111_p1 }
   0x9   :  { %p114_p4 = pnand %p113_p3, %p107_p0 }
   0xb   :  { %117 = shalt.err (!%p114_p4)
}
   0xc   :  { %22 = dma.hbm_to_vmem [thread:$0]  %s215_s0, 128, %s20_s19, [#allocation3]  }
   0xd   :  { %s126_s25 = scalar_lea.vmem %s30_s21, 128  ;;  %p131_p6 = scmp.lt.s32.totalorder %s30_s21, %s30_s21 }
   0xe   :  { %p127_p5 = scmp.ne.s32.totalorder %s30_s21, %s126_s25  ;;  %p132_p7 = scmp.lt.s32.totalorder %s126_s25, %s126_s25 }
  0x10   :  { %p133_p8 = por %p132_p7, %p131_p6 }
  0x12   :  { %p134_p9 = pnand %p133_p8, %p127_p5 }
  0x14   :  { %137 = shalt.err (!%p134_p9)
}
  0x15   :  { %32 = dma.hbm_to_vmem [thread:$0]  %s216_s1, 128, %s30_s21, [#allocation6]  }
  0x16   :  { %158 = dma.done.wait [#allocation3], 128  }
  0x17   :  { %159 = vsyncadd [#allocation3], 4294967168 }
  0x18   :  { %160 = dma.done.wait [#allocation6], 128  }
  0x19   :  { %161 = vsyncadd [#allocation6], 4294967168  ;;  %v45_v0 = vld [vmem:[#allocation2] sm:$0xff]  ;;  %v46_v1 = vld [vmem:[#allocation5] sm:$0xff]  ;;  %s166_s1 = smov [#allocation7]  }
  0x1a   :  { %v90_v2 = vld [vmem:[%s217_s2] ss:$0 sm:$0xff]  ;;  %s80_s8 = sshll.u32 %s166_s1, 4  ;;  %s81_s8 = int_to_ptr.vmem [resolvable:$true] %s80_s8 }
  0x1b   :  { %v91_v3 = vld [vmem:[%s218_s3] ss:$0 sm:$0xff]  ;;  %v56_v4 = vmul.f32 %v90_v2, %v45_v0  ;;  %s138_s9 = scalar_lea.vmem %s81_s8, 128  ;;  %p143_p11 = scmp.lt.s32.totalorder %s81_s8, %s81_s8 }
  0x1c   :  { %v63_v5 = vmul.f32 %v91_v3, %v46_v1  ;;  %v92_v6 = vld [vmem:[%s219_s4] ss:$0 sm:$0xff]  ;;  %p139_p10 = scmp.ne.s32.totalorder %s81_s8, %s138_s9  ;;  %p144_p12 = scmp.lt.s32.totalorder %s138_s9, %s138_s9 }
  0x1e   :  { %v64_v7 = vadd.f32 %v63_v5, %v56_v4  ;;  %p145_p13 = por %p144_p12, %p143_p11 }
  0x20   :  { %v71_v8 = vadd.f32 %v92_v6, %v64_v7  ;;  %p146_p0 = pnand %p145_p13, %p139_p10 }
  0x22   :  { %96 = vtanh.f32 %v71_v8 }
  0x2f   :  { %v97_v9 = vpop.eup %96 }
  0x30   :  { %73 = vst [vmem:[#allocation7] sm:$0xff] %v97_v9 }
  0x31   :  { %149 = shalt.err (!%p146_p0)
}
  0x32   :  { %83 = dma.vmem_to_hbm [thread:$0]  %s81_s8, 128, %s220_s5, [#allocation4]  }
  0x33   :  { %162 = dma.done.wait [#allocation4], 128  }
  0x34   :  { %163 = vsyncadd [#allocation4], 4294967168 }
  0x35   :  { %87 = vsyncpa [#allocation3], 1 }
  0x36   :  { %88 = vsyncpa [#allocation6], 1 }
  0x37   :  { %89 = vsyncpa [#allocation4], 1 }

</bundles_post_ra>
